<compile_context>
chip_gen: v6e
topology: v6e:2x2x1
jax: 0.10.0
libtpu: 0.0.40
codegen_flags: <defaults>
</compile_context>

<pallas_src>
import functools

import jax
import jax.numpy as jnp
from jax.experimental import pallas as pl
from jax.experimental.pallas import tpu as pltpu


def _round_up(x: int, m: int) -> int:
    return ((x + m - 1) // m) * m


def _mmd_rbf_kernel(tri_i_ref, tri_j_ref,        # scalar prefetch (SMEM, int32)
                    nib_ref,                      # (kernel_num,) SMEM, -1/bw_s
                    rw_ref, cw_ref,               # signed weights (tm,1)/(1,tn)
                    rn_ref, cn_ref,               # squared norms  (tm,1)/(1,tn)
                    a_ref, b_ref,                 # feature blocks (tm,tk)/(tn,tk)
                    out_ref,                      # (1, 8, tn) per-tile partial
                    *scratch,
                    kernel_mul, kernel_num, nk):
    t = pl.program_id(0)

    # MXU: Gram block for this (row-tile, col-tile) and K chunk.
    partial_dot = jax.lax.dot_general(
        a_ref[...], b_ref[...], (((1,), (1,)), ((), ())),
        preferred_element_type=jnp.float32)

    def _epilogue(dot):
        rn = rn_ref[...]                                   # (tm, 1)
        cn = cn_ref[...]                                   # (1, tn)
        l2 = jnp.maximum(rn + cn - 2.0 * dot, 0.0)         # clamp rounding

        if kernel_mul == 2.0:
            # One EUP exp (largest bandwidth); other scales by squaring:
            # exp(-l2/bw)^2 == exp(-l2/(bw/2)).
            e = jnp.exp(l2 * nib_ref[kernel_num - 1])
            ksum = e
            for _ in range(kernel_num - 1):
                e = e * e
                ksum = ksum + e
        else:
            ksum = jnp.exp(l2 * nib_ref[0])
            for s in range(1, kernel_num):
                ksum = ksum + jnp.exp(l2 * nib_ref[s])

        # Fold the signed row weights, then reduce only across sublane groups
        # (pure vreg adds); cross-lane reduction happens outside the kernel.
        kw = ksum * rw_ref[...]                            # (tm, tn)
        g = kw.shape[0] // 8
        part8 = jnp.sum(kw.reshape(g, 8, kw.shape[1]), axis=0)   # (8, tn)

        # Off-diagonal triangle tiles represent (i,j) AND (j,i): count twice.
        factor = jnp.where(tri_i_ref[t] == tri_j_ref[t],
                           jnp.float32(1.0), jnp.float32(2.0))
        out_ref[...] = (part8 * cw_ref[...] * factor)[None].astype(out_ref.dtype)

    if nk == 1:
        # Fast path: single K step, no scratch round-trip.
        _epilogue(partial_dot)
    else:
        (dot_acc,) = scratch
        k = pl.program_id(1)

        @pl.when(k == 0)
        def _():
            dot_acc[...] = partial_dot            # write (no zero-init + RMW)

        @pl.when(k > 0)
        def _():
            dot_acc[...] += partial_dot

        @pl.when(k == nk - 1)
        def _():
            _epilogue(dot_acc[...])


def mmd_loss_rbf(source, target, kernel_mul=2.0, kernel_num=5, fix_sigma=None):
    """Forward pass of MMD_loss with kernel_type='rbf'. Returns a scalar."""
    assert source.ndim == 2 and target.ndim == 2
    assert source.shape[1] == target.shape[1]
    bs, d = source.shape
    bt = target.shape[0]
    n = bs + bt

    total = jnp.concatenate([source.astype(jnp.float32),
                             target.astype(jnp.float32)], axis=0)
    # Centering leaves all pairwise distances unchanged but makes the Gram
    # identity far better conditioned.
    total = total - jnp.mean(total, axis=0, keepdims=True)

    # Row squared norms (reused by the kernel) and analytic bandwidth:
    #   sum_{i,j} ||x_i - x_j||^2 = 2*n*sum_i ||x_i||^2 - 2*||sum_i x_i||^2
    sq = jnp.sum(total * total, axis=1)                       # (n,)
    col = jnp.sum(total, axis=0)                              # (d,)
    sum_l2 = jnp.maximum(2.0 * n * jnp.sum(sq) - 2.0 * jnp.dot(col, col), 0.0)
    if fix_sigma:
        bandwidth = jnp.float32(fix_sigma)
    else:
        bandwidth = sum_l2 / jnp.float32(n * n - n)
    bandwidth = bandwidth / (kernel_mul ** (kernel_num // 2))
    neg_inv_bw = jnp.stack(
        [-1.0 / (bandwidth * (kernel_mul ** s)) for s in range(kernel_num)]
    ).astype(jnp.float32)

    # ---- tiling ----
    if d <= 128:
        d_pad = 128
        tk = d_pad
    elif d <= 2048:
        d_pad = _round_up(d, 256)
        tk = d_pad                         # single K step -> resident LHS block
    else:
        tk = 1024
        d_pad = _round_up(d, tk)
    nk = d_pad // tk

    if n <= 128:
        tm = tn = _round_up(n, 8)
    elif n <= 512:
        tm = tn = _round_up(n, 128)
    else:
        tm = tn = 512
    n_pad = _round_up(n, tm)
    n_row_tiles = n_pad // tm

    # Padded features, squared norms and signed weights.
    total_pad = jnp.pad(total, ((0, n_pad - n), (0, d_pad - d)))
    sq_pad = jnp.pad(sq, (0, n_pad - n)).astype(jnp.float32)
    ids = jnp.arange(n_pad)
    w = jnp.where(ids < bs, 1.0 / bs,
                  jnp.where(ids < n, -1.0 / bt, 0.0)).astype(jnp.float32)
    rn_in = sq_pad[:, None]                # (n_pad, 1)
    cn_in = sq_pad[None, :]                # (1, n_pad)
    rw_in = w[:, None]                     # (n_pad, 1)
    cw_in = w[None, :]                     # (1, n_pad)

    # Upper-triangle tile enumeration; row-tile outer so the LHS block index is
    # invariant across its run of column tiles (stays resident in VMEM).
    tri_i_l, tri_j_l = [], []
    for i in range(n_row_tiles):
        for j in range(i, n_row_tiles):
            tri_i_l.append(i)
            tri_j_l.append(j)
    num_tri = len(tri_i_l)
    tri_i = jnp.asarray(tri_i_l, dtype=jnp.int32)
    tri_j = jnp.asarray(tri_j_l, dtype=jnp.int32)

    grid = (num_tri, nk)
    kernel_fn = functools.partial(
        _mmd_rbf_kernel, kernel_mul=kernel_mul, kernel_num=kernel_num, nk=nk)

    scratch_shapes = []
    if nk > 1:
        scratch_shapes.append(pltpu.VMEM((tm, tn), jnp.float32))

    partials = pl.pallas_call(
        kernel_fn,
        out_shape=jax.ShapeDtypeStruct((num_tri, 8, tn), jnp.float32),
        grid_spec=pltpu.PrefetchScalarGridSpec(
            num_scalar_prefetch=2,
            grid=grid,
            in_specs=[
                # per-scale -1/bandwidth coefficients (scalar reads)
                pl.BlockSpec(memory_space=pltpu.MemorySpace.SMEM),
                # signed row / col weights
                pl.BlockSpec((tm, 1), lambda t, k, ti, tj: (ti[t], 0)),
                pl.BlockSpec((1, tn), lambda t, k, ti, tj: (0, tj[t])),
                # row / col squared norms
                pl.BlockSpec((tm, 1), lambda t, k, ti, tj: (ti[t], 0)),
                pl.BlockSpec((1, tn), lambda t, k, ti, tj: (0, tj[t])),
                # LHS row block and RHS (column) row block of `total`
                pl.BlockSpec((tm, tk), lambda t, k, ti, tj: (ti[t], k)),
                pl.BlockSpec((tn, tk), lambda t, k, ti, tj: (tj[t], k)),
            ],
            out_specs=pl.BlockSpec((1, 8, tn), lambda t, k, ti, tj: (t, 0, 0)),
            scratch_shapes=scratch_shapes),
        compiler_params=pltpu.CompilerParams(
            # Distinct output block per triangle tile -> tile axis is parallel
            # (v7x megacore); the K-reduction axis stays arbitrary.
            dimension_semantics=("parallel", "arbitrary"),
            vmem_limit_bytes=48 * 1024 * 1024),
    )(tri_i, tri_j, neg_inv_bw, rw_in, cw_in, rn_in, cn_in,
      total_pad, total_pad)

    # Tiny cross-lane reduction of the per-tile partials in plain JAX.
    return jnp.sum(partials)

# TODO(synk): kernel_type='linear' (linear_mmd2) branch not implemented; the
# module's default/used path is 'rbf'.


def _mmd_loss_rbf_ref(source, target, kernel_mul=2.0, kernel_num=5,
                      fix_sigma=None):
    """Pure-JAX reference mirroring the PyTorch forward (diff/expand path)."""
    batch = source.shape[0]
    total = jnp.concatenate([source, target], axis=0).astype(jnp.float32)
    n = total.shape[0]
    diff = total[None, :, :] - total[:, None, :]
    l2 = jnp.sum(diff * diff, axis=2)
    if fix_sigma:
        bandwidth = jnp.float32(fix_sigma)
    else:
        bandwidth = jnp.sum(l2) / (n * n - n)
    bandwidth = bandwidth / (kernel_mul ** (kernel_num // 2))
    kernels = sum(jnp.exp(-l2 / (bandwidth * kernel_mul ** i))
                  for i in range(kernel_num))
    b = batch
    xx = jnp.mean(kernels[:b, :b])
    yy = jnp.mean(kernels[b:, b:])
    xy = jnp.mean(kernels[:b, b:])
    yx = jnp.mean(kernels[b:, :b])
    return xx + yy - xy - yx


if __name__ == "__main__":
    # MMD_loss has no learnable parameters; only hyperparameters below.
    kernel_mul, kernel_num = 2.0, 5

    key = jax.random.PRNGKey(0)
    ks = jax.random.split(key, 8)

    def check(src, tgt, rtol=1e-3, atol=1e-6):
        loss = mmd_loss_rbf(src, tgt, kernel_mul=kernel_mul,
                            kernel_num=kernel_num, fix_sigma=None)
        loss = jax.block_until_ready(loss)
        ref = _mmd_loss_rbf_ref(src, tgt, kernel_mul=kernel_mul,
                                kernel_num=kernel_num, fix_sigma=None)
        assert jnp.allclose(loss, ref, rtol=rtol, atol=atol), (loss, ref)

    # Case 1: small flat features (batch=8, hidden=32); single tile, nk == 1.
    check(jax.random.normal(ks[0], (8, 32), dtype=jnp.float32),
          jax.random.normal(ks[1], (8, 32), dtype=jnp.float32) + 0.5)

    # Case 2: D=200 exercises lane padding (d_pad = 256).
    check(jax.random.normal(ks[2], (12, 200), dtype=jnp.float32),
          jax.random.normal(ks[3], (12, 200), dtype=jnp.float32) * 1.2 + 0.3)

    # Case 3: n > 512 and unequal batches -> multiple row/col tiles; exercises
    # the upper-triangle enumeration, off-diagonal doubling and resident-LHS
    # reuse across the column-tile run.
    check(jax.random.normal(ks[4], (260, 64), dtype=jnp.float32),
          jax.random.normal(ks[5], (300, 64), dtype=jnp.float32) + 0.5)

    # Case 4: unequal batches + D > 2048 -> K-chunked Gram accumulation
    # (nk > 1, VMEM scratch path).
    check(jax.random.normal(ks[6], (6, 2304), dtype=jnp.float32),
          jax.random.normal(ks[7], (10, 2304), dtype=jnp.float32) + 0.25)

    print("KERNEL_OK")
</pallas_src>

<mosaic_0001>
module attributes {stable_mosaic.version = 11 : i64} {
  func.func @_mmd_rbf_kernel(%arg0: i32, %arg1: i32, %arg2: memref<1xi32, #tpu.memory_space<smem>>, %arg3: memref<1xi32, #tpu.memory_space<smem>>, %arg4: memref<5xf32, #tpu.memory_space<smem>>, %arg5: memref<16x1xf32, #tpu.memory_space<vmem>>, %arg6: memref<1x16xf32, #tpu.memory_space<vmem>>, %arg7: memref<16x1xf32, #tpu.memory_space<vmem>>, %arg8: memref<1x16xf32, #tpu.memory_space<vmem>>, %arg9: memref<16x128xf32, #tpu.memory_space<vmem>>, %arg10: memref<16x128xf32, #tpu.memory_space<vmem>>, %arg11: memref<1x8x16xf32, #tpu.memory_space<vmem>>) attributes {dimension_semantics = [#tpu.dimension_semantics<parallel>, #tpu.dimension_semantics<arbitrary>], iteration_bounds = array<i64: 1, 1>, scalar_prefetch = 2 : i64, scratch_operands = 0 : i64, tpu.core_type = #tpu.core_type<tc>, window_params = [{transform_indices = @transform_0, window_bounds = array<i64: 5>}, {transform_indices = @transform_1, window_bounds = array<i64: 16, 1>}, {transform_indices = @transform_2, window_bounds = array<i64: 1, 16>}, {transform_indices = @transform_3, window_bounds = array<i64: 16, 1>}, {transform_indices = @transform_4, window_bounds = array<i64: 1, 16>}, {transform_indices = @transform_5, window_bounds = array<i64: 16, 128>}, {transform_indices = @transform_6, window_bounds = array<i64: 16, 128>}, {transform_indices = @transform_7, window_bounds = array<i64: 1, 8, 16>}]} {
    %c0 = arith.constant 0 : index
    %c0_0 = arith.constant 0 : index
    %0 = vector.load %arg9[%c0, %c0_0] : memref<16x128xf32, #tpu.memory_space<vmem>>, vector<16x128xf32>
    %c0_1 = arith.constant 0 : index
    %c0_2 = arith.constant 0 : index
    %1 = vector.load %arg10[%c0_1, %c0_2] : memref<16x128xf32, #tpu.memory_space<vmem>>, vector<16x128xf32>
    %cst = arith.constant dense<0.000000e+00> : vector<16x16xf32>
    %2 = tpu.matmul %0, %1, %cst {dimension_numbers = #tpu.dot_dimension_numbers<[1], [1], [0], [0], [0, 0, 1, 0], [], []>} : vector<16x128xf32>, vector<16x128xf32>, vector<16x16xf32> -> vector<16x16xf32>
    %c0_3 = arith.constant 0 : index
    %c0_4 = arith.constant 0 : index
    %3 = vector.load %arg7[%c0_3, %c0_4] : memref<16x1xf32, #tpu.memory_space<vmem>>, vector<16x1xf32>
    %c0_5 = arith.constant 0 : index
    %c0_6 = arith.constant 0 : index
    %4 = vector.load %arg8[%c0_5, %c0_6] : memref<1x16xf32, #tpu.memory_space<vmem>>, vector<1x16xf32>
    %5 = vector.broadcast %3 : vector<16x1xf32> to vector<16x16xf32>
    %6 = vector.broadcast %4 : vector<1x16xf32> to vector<16x16xf32>
    %7 = arith.addf %5, %6 : vector<16x16xf32>
    %cst_7 = arith.constant 2.000000e+00 : f32
    %8 = vector.broadcast %cst_7 : f32 to vector<16x16xf32>
    %9 = arith.mulf %8, %2 : vector<16x16xf32>
    %10 = arith.subf %7, %9 : vector<16x16xf32>
    %cst_8 = arith.constant 0.000000e+00 : f32
    %11 = vector.broadcast %cst_8 : f32 to vector<16x16xf32>
    %12 = arith.maximumf %10, %11 : vector<16x16xf32>
    %c4 = arith.constant 4 : index
    %13 = memref.load %arg4[%c4] : memref<5xf32, #tpu.memory_space<smem>>
    %14 = vector.broadcast %13 : f32 to vector<16x16xf32>
    %15 = arith.mulf %12, %14 : vector<16x16xf32>
    %16 = math.exp %15 : vector<16x16xf32>
    %17 = arith.mulf %16, %16 : vector<16x16xf32>
    %18 = arith.addf %16, %17 : vector<16x16xf32>
    %19 = arith.mulf %17, %17 : vector<16x16xf32>
    %20 = arith.addf %18, %19 : vector<16x16xf32>
    %21 = arith.mulf %19, %19 : vector<16x16xf32>
    %22 = arith.addf %20, %21 : vector<16x16xf32>
    %23 = arith.mulf %21, %21 : vector<16x16xf32>
    %24 = arith.addf %22, %23 : vector<16x16xf32>
    %c0_9 = arith.constant 0 : index
    %c0_10 = arith.constant 0 : index
    %25 = vector.load %arg5[%c0_9, %c0_10] : memref<16x1xf32, #tpu.memory_space<vmem>>, vector<16x1xf32>
    %26 = vector.broadcast %25 : vector<16x1xf32> to vector<16x16xf32>
    %27 = arith.mulf %24, %26 : vector<16x16xf32>
    %28 = vector.shape_cast %27 : vector<16x16xf32> to vector<2x8x16xf32>
    %cst_11 = arith.constant dense<0.000000e+00> : vector<8x16xf32>
    %29 = vector.multi_reduction <add>, %28, %cst_11 [0] : vector<2x8x16xf32> to vector<8x16xf32>
    %30 = arith.index_cast %arg0 : i32 to index
    %31 = memref.load %arg2[%30] : memref<1xi32, #tpu.memory_space<smem>>
    %32 = arith.index_cast %arg0 : i32 to index
    %33 = memref.load %arg3[%32] : memref<1xi32, #tpu.memory_space<smem>>
    %34 = arith.cmpi eq, %31, %33 : i32
    %cst_12 = arith.constant 1.000000e+00 : f32
    %cst_13 = arith.constant 2.000000e+00 : f32
    %35 = arith.select %34, %cst_12, %cst_13 : f32
    %c0_14 = arith.constant 0 : index
    %c0_15 = arith.constant 0 : index
    %36 = vector.load %arg6[%c0_14, %c0_15] : memref<1x16xf32, #tpu.memory_space<vmem>>, vector<1x16xf32>
    %37 = vector.broadcast %36 : vector<1x16xf32> to vector<8x16xf32>
    %38 = arith.mulf %29, %37 : vector<8x16xf32>
    %39 = vector.broadcast %35 : f32 to vector<8x16xf32>
    %40 = arith.mulf %38, %39 : vector<8x16xf32>
    %41 = vector.shape_cast %40 : vector<8x16xf32> to vector<1x8x16xf32>
    %c0_16 = arith.constant 0 : index
    %c0_17 = arith.constant 0 : index
    %c0_18 = arith.constant 0 : index
    %42 = vector.load %arg11[%c0_16, %c0_17, %c0_18] : memref<1x8x16xf32, #tpu.memory_space<vmem>>, vector<1x8x16xf32>
    tpu.vector_store %arg11[%c0_16, %c0_17, %c0_18], %41 {strides = array<i32>} : memref<1x8x16xf32, #tpu.memory_space<vmem>>, vector<1x8x16xf32>,
    return
  }
  func.func @transform_0(%arg0: i32, %arg1: i32, %arg2: memref<1xi32, #tpu.memory_space<smem>>, %arg3: memref<1xi32, #tpu.memory_space<smem>>) -> i32 {
    %c0_i32 = arith.constant 0 : i32
    %c0_i32_0 = arith.constant 0 : i32
    return %c0_i32 : i32
  }
  func.func @transform_1(%arg0: i32, %arg1: i32, %arg2: memref<1xi32, #tpu.memory_space<smem>>, %arg3: memref<1xi32, #tpu.memory_space<smem>>) -> (i32, i32) {
    %0 = arith.index_cast %arg0 : i32 to index
    %1 = memref.load %arg2[%0] : memref<1xi32, #tpu.memory_space<smem>>
    %c0_i32 = arith.constant 0 : i32
    %c0_i32_0 = arith.constant 0 : i32
    return %1, %c0_i32 : i32, i32
  }
  func.func @transform_2(%arg0: i32, %arg1: i32, %arg2: memref<1xi32, #tpu.memory_space<smem>>, %arg3: memref<1xi32, #tpu.memory_space<smem>>) -> (i32, i32) {
    %0 = arith.index_cast %arg0 : i32 to index
    %1 = memref.load %arg3[%0] : memref<1xi32, #tpu.memory_space<smem>>
    %c0_i32 = arith.constant 0 : i32
    %c0_i32_0 = arith.constant 0 : i32
    return %c0_i32, %1 : i32, i32
  }
  func.func @transform_3(%arg0: i32, %arg1: i32, %arg2: memref<1xi32, #tpu.memory_space<smem>>, %arg3: memref<1xi32, #tpu.memory_space<smem>>) -> (i32, i32) {
    %0 = arith.index_cast %arg0 : i32 to index
    %1 = memref.load %arg2[%0] : memref<1xi32, #tpu.memory_space<smem>>
    %c0_i32 = arith.constant 0 : i32
    %c0_i32_0 = arith.constant 0 : i32
    return %1, %c0_i32 : i32, i32
  }
  func.func @transform_4(%arg0: i32, %arg1: i32, %arg2: memref<1xi32, #tpu.memory_space<smem>>, %arg3: memref<1xi32, #tpu.memory_space<smem>>) -> (i32, i32) {
    %0 = arith.index_cast %arg0 : i32 to index
    %1 = memref.load %arg3[%0] : memref<1xi32, #tpu.memory_space<smem>>
    %c0_i32 = arith.constant 0 : i32
    %c0_i32_0 = arith.constant 0 : i32
    return %c0_i32, %1 : i32, i32
  }
  func.func @transform_5(%arg0: i32, %arg1: i32, %arg2: memref<1xi32, #tpu.memory_space<smem>>, %arg3: memref<1xi32, #tpu.memory_space<smem>>) -> (i32, i32) {
    %0 = arith.index_cast %arg0 : i32 to index
    %1 = memref.load %arg2[%0] : memref<1xi32, #tpu.memory_space<smem>>
    %c0_i32 = arith.constant 0 : i32
    return %1, %arg1 : i32, i32
  }
  func.func @transform_6(%arg0: i32, %arg1: i32, %arg2: memref<1xi32, #tpu.memory_space<smem>>, %arg3: memref<1xi32, #tpu.memory_space<smem>>) -> (i32, i32) {
    %0 = arith.index_cast %arg0 : i32 to index
    %1 = memref.load %arg3[%0] : memref<1xi32, #tpu.memory_space<smem>>
    %c0_i32 = arith.constant 0 : i32
    return %1, %arg1 : i32, i32
  }
  func.func @transform_7(%arg0: i32, %arg1: i32, %arg2: memref<1xi32, #tpu.memory_space<smem>>, %arg3: memref<1xi32, #tpu.memory_space<smem>>) -> (i32, i32, i32) {
    %c0_i32 = arith.constant 0 : i32
    %c0_i32_0 = arith.constant 0 : i32
    %c0_i32_1 = arith.constant 0 : i32
    return %arg0, %c0_i32, %c0_i32_0 : i32, i32, i32
  }
}

</mosaic_0001>

<bundles_post_ra>
// kernel: tpu_custom_call.1
= control target key start
LH: loop header
LB: loop body
LE: loop exit
PB: predicated region body
PF: predicated region fallthrough
CT: control target
= control target key end

     0   :  { %16 = vsyncpa [#allocation7], 0  ;;  %s534_s0 = inlined_call_operand.<no memory space> [shape: s32[1], index: 0, kind: input, shape index: {}]   ;;  %s535_s1 = inlined_call_operand.<no memory space> [shape: s32[1], index: 1, kind: input, shape index: {}]   ;;  %s536_s2 = inlined_call_operand.vmem [shape: f32[5], index: 2, kind: input, shape index: {}]   ;;  %s537_s3 = inlined_call_operand.vmem [shape: f32[16,1], index: 3, kind: input, shape index: {}]   ;;  %s538_s4 = inlined_call_operand.vmem [shape: f32[1,16], index: 4, kind: input, shape index: {}]   ;;  %s539_s5 = inlined_call_operand.vmem [shape: f32[16,1], index: 5, kind: input, shape index: {}]   ;;  %s540_s6 = inlined_call_operand.vmem [shape: f32[1,16], index: 6, kind: input, shape index: {}]   ;;  %s541_s7 = inlined_call_operand.vmem [shape: f32[16,128], index: 7, kind: input, shape index: {}]   ;;  %s542_s8 = inlined_call_operand.vmem [shape: f32[16,128], index: 8, kind: input, shape index: {}]   ;;  %s543_s9 = inlined_call_operand.hbm [shape: f32[1,8,16], index: 9, kind: output, shape index: {}]  }
   0x1   :  { %17 = vsyncpa [#allocation6], 0  ;;  %s24_s11 = sshll.u32 %s536_s2, 4  ;;  %s25_s11 = int_to_ptr.vmem [resolvable:$true] %s24_s11 }
   0x2   :  { %s399_s12 = scalar_lea.vmem %s25_s11, 16  ;;  %p404_p1 = scmp.lt.s32.totalorder %s25_s11, %s25_s11 }
   0x3   :  { %p400_p0 = scmp.ne.s32.totalorder %s25_s11, %s399_s12  ;;  %p405_p2 = scmp.lt.s32.totalorder %s399_s12, %s399_s12 }
   0x5   :  { %p406_p3 = por %p405_p2, %p404_p1 }
   0x7   :  { %p407_p4 = pnand %p406_p3, %p400_p0 }
   0x9   :  { %410 = shalt.err (!%p407_p4)
}
   0xa   :  { %s435_s13 = smov [#allocation5]  }
   0xb   :  { %27 = dma.vmem_to_smem %s25_s11, 16, %s435_s13, [#allocation7]  }
   0xc   :  { %431 = dma.done.wait [#allocation7], 16  }
   0xd   :  { %432 = vsyncadd [#allocation7], 4294967280 }
   0xe   :  { %85 = sfence }
   0xf   :  { %s374_s16 = sshll.u32 %s535_s1, 1  ;;  %s368_s2 = sshll.u32 %s534_s0, 1  ;;  %v436_v0 = vmov 0   ;;  %vm304_vm0 = vcmask 130048  }
  0x10   :  { %p154_p5 = scmp.lt.s32.totalorder %s374_s16, 1  ;;  %p120_p6 = scmp.lt.s32.totalorder %s368_s2, 1  ;;  %393 = vset.pattern.permute.xlu0 %v436_v0  ;;  %394 = vset.pattern.permute.xlu1 %v436_v0 }
  0x11   :  { %p127_p7 = scmp.lt.s32.totalorder %s535_s1, 0  ;;  %p310_p8 = scmp.eq.s32.totalorder %s534_s0, %s535_s1 }
  0x12   :  { %s545_s16 = smov (!%p154_p5, %s374_s16), 1  ;;  %s547_s2 = smov (!%p120_p6, %s368_s2), 1 }
  0x13   :  { %s375_s19 = sshll.u32 %s545_s16, 3  ;;  %s369_s23 = sshll.u32 %s547_s2, 3 }
  0x14   :  { %s157_s22 = scalar_lea.vmem %s542_s8, %s375_s19  ;;  %s149_s26 = scalar_lea.vmem %s541_s7, %s369_s23 }
  0x15   :  { %v163_v1 = vld [vmem:[%s157_s22 + $0x8] sm:$0xff]  ;;  %v162_v2 = vld [vmem:[%s157_s22] sm:$0xff]  ;;  %s136_s29 = scalar_lea.vmem %s539_s5, %s369_s23  ;;  %s123_s11 = scalar_lea.vmem %s537_s3, %s369_s23 }
  0x16   :  { %383 = vmatprep.subr.mxu0 %v163_v1  ;;  %v160_v3 = vld [vmem:[%s149_s26] sm:$0xff]  ;;  %v240_v6 = vld [vmem:[%s136_s29 + $0x8] sm:$0xff]  ;;  %s515_s3 = scalar_select %p127_p7, %s535_s1, 0 }
  0x17   :  { %v239_v4 = vld [vmem:[%s136_s29] sm:$0xff]  ;;  %384 = vmatpush3.xpose.msra.mxu0 %v163_v1  ;;  %387 = vmatprep.mubr.f32.mxu0 %v160_v3  ;;  %v291_v7 = vld [vmem:[%s123_s11 + $0x8] sm:$0xff]  ;;  %s377_s16 = sld [smem:[#allocation5 + $0x4]]  ;;  %s437_s23 = smov [#allocation8]  }
  0x18   :  { %v290_v5 = vld [vmem:[%s123_s11] sm:$0xff]  ;;  %385 = vmatprep.subr.mxu0 %v162_v2  ;;  %244 = vperm.xlu0 %393, %v239_v4   ;;  %v161_v8 = vld [vmem:[%s149_s26 + $0x8] sm:$0xff]  ;;  %s142_s15 = scalar_lea.vmem %s540_s6, %s515_s3  ;;  %s129_s21 = scalar_lea.vmem %s538_s4, %s515_s3 }
  0x19   :  { %294 = vperm.xlu1 %394, %v290_v5   ;;  %v376_v10 = vld [vmem:[%s142_s15] ss:$0 sm:$0xff]  ;;  %s311_s22 = scalar_select %p310_p8, 1.0, 2.0 }
  0x1a   :  { %v378_v51 = vld [vmem:[%s129_s21] ss:$0 sm:$0xff]  ;;  %s329_s24 = sshll.u32 %s437_s23, 4  ;;  %s330_s24 = int_to_ptr.vmem [resolvable:$true] %s329_s24 }
  0x1b   :  { %386 = vmatpush3.xpose.msra.mxu0 %v162_v2  ;;  %v320_v53 = vstv %s311_s22  ;;  %s411_s0 = scalar_lea.vmem %s330_s24, 128  ;;  %p416_p10 = scmp.lt.s32.totalorder %s330_s24, %s330_s24 }
  0x1c   :  { %249 = vperm.xlu0 %393, %v240_v6   ;;  %p412_p9 = scmp.ne.s32.totalorder %s330_s24, %s411_s0  ;;  %p417_p11 = scmp.lt.s32.totalorder %s411_s0, %s411_s0 }
  0x1d   :  { %299 = vperm.xlu1 %394, %v291_v7   ;;  %v267_v19 = vstv %s377_s16 }
  0x1e   :  { %388 = vmatmul.mubr.f32.vlgmr.msra.gmra.mxu0 %v161_v8  ;;  %p418_p12 = por %p417_p11, %p416_p10 }
  0x20   :  { %p419_p13 = pnand %p418_p12, %p412_p9 }
  0x93   :  { %v245_v9 = vpop.permute.xlu0 %244 }
  0x94   :  { %v258_v16 = vadd.f32 %v376_v10, %v245_v9  ;;  %v295_v33 = vpop.permute.xlu1 %294 }
  0x97   :  { %v250_v11 = vpop.permute.xlu0 %249 }
  0x98   :  { %v259_v13 = vadd.f32 %v376_v10, %v250_v11  ;;  %v300_v45 = vpop.permute.xlu1 %299 }
  0xde   :  { %v389_v12 = vpop.f32.mrf.mxu0 }
  0xdf   :  { %v261_v14 = vmul.f32 2.0, %v389_v12 }
  0xe0   :  { %v230_v15 = vpop.f32.mrf.mxu0 }
  0xe1   :  { %v263_v17 = vsub.f32 %v259_v13, %v261_v14  ;;  %v260_v18 = vmul.f32 2.0, %v230_v15 }
  0xe3   :  { %v265_v20 = vmax.f32 %v263_v17, 0.0  ;;  %v262_v21 = vsub.f32 %v258_v16, %v260_v18 }
  0xe5   :  { %v269_v22 = vmul.f32 %v267_v19, %v265_v20  ;;  %v264_v23 = vmax.f32 %v262_v21, 0.0 }
  0xe7   :  { %v272_v24 = vmul.f32 1.442695, %v269_v22  ;;  %v268_v25 = vmul.f32 %v267_v19, %v264_v23 }
  0xe9   :  { %395 = vpow2.f32 %v272_v24  ;;  %v270_v26 = vmul.f32 1.442695, %v268_v25 }
  0xeb   :  { %397 = vpow2.f32 %v270_v26 }
  0xf6   :  { %v396_v27 = vpop.eup %395 }
  0xf7   :  { %v275_v28 = vmul.f32 %v396_v27, %v396_v27 }
  0xf8   :  { %v398_v29 = vpop.eup %397 }
  0xf9   :  { %v274_v30 = vmul.f32 %v398_v29, %v398_v29  ;;  %v277_v31 = vadd.f32 %v396_v27, %v275_v28  ;;  %v279_v32 = vmul.f32 %v275_v28, %v275_v28 }
  0xfb   :  { %v276_v34 = vadd.f32 %v398_v29, %v274_v30  ;;  %v278_v35 = vmul.f32 %v274_v30, %v274_v30  ;;  %v281_v36 = vadd.f32 %v279_v32, %v277_v31  ;;  %v283_v37 = vmul.f32 %v279_v32, %v279_v32 }
  0xfd   :  { %v280_v38 = vadd.f32 %v278_v35, %v276_v34  ;;  %v282_v39 = vmul.f32 %v278_v35, %v278_v35  ;;  %v285_v40 = vadd.f32 %v283_v37, %v281_v36  ;;  %v287_v41 = vmul.f32 %v283_v37, %v283_v37 }
  0xff   :  { %v284_v42 = vadd.f32 %v282_v39, %v280_v38  ;;  %v286_v43 = vmul.f32 %v282_v39, %v282_v39  ;;  %v289_v44 = vadd.f32 %v287_v41, %v285_v40 }
 0x101   :  { %v288_v46 = vadd.f32 %v286_v43, %v284_v42  ;;  %v303_v47 = vmul.f32 %v300_v45, %v289_v44 }
 0x103   :  { %v302_v48 = vmul.f32 %v295_v33, %v288_v46  ;;  %v306_v50 = vsel %vm304_vm0, %v303_v47, 0.0 }
 0x105   :  { %v305_v49 = vsel %vm304_vm0, %v302_v48, 0.0 }
 0x106   :  { %v307_v52 = vadd.f32 %v306_v50, %v305_v49 }
 0x108   :  { %v319_v54 = vmul.f32 %v378_v51, %v307_v52 }
 0x10a   :  { %v321_v55 = vmul.f32 %v320_v53, %v319_v54 }
 0x10c   :  { %322 = vst.msk [vmem:[#allocation8] sm:$0xff] %vm304_vm0, %v321_v55 }
 0x10d   :  { %422 = shalt.err (!%p419_p13)
}
 0x10e   :  { %332 = dma.vmem_to_hbm [thread:$0]  %s330_s24, 128, %s543_s9, [#allocation6]  }
 0x10f   :  { %433 = dma.done.wait [#allocation6], 128  }
 0x110   :  { %434 = vsyncadd [#allocation6], 4294967168 }
 0x111   :  { %336 = vsyncpa [#allocation6], 1 }
 0x112   :  { %337 = vsyncpa [#allocation7], 1 }

</bundles_post_ra>
